<compile_context>
chip_gen: v7x
topology: tpu7x:2x2x1
jax: 0.10.0
libtpu: 0.0.40
codegen_flags: <defaults>
</compile_context>

<pallas_src>
import functools

import jax
import jax.numpy as jnp
from jax import lax
from jax.experimental import pallas as pl
from jax.experimental.pallas import tpu as pltpu


# ---------------------------------------------------------------------------
# Kernel: one (query-tile, KV-tile) grid step of the Global_ATT forward
# ---------------------------------------------------------------------------
def global_att_kernel(xq_ref, xkv_ref, wq_ref, wkv_ref, wf_ref, bf_ref,
                      o_ref, q_scr, att_scr, *, num_heads, mxu_dtype):
    H = xq_ref.shape[-1]
    d = H // num_heads
    j = pl.program_id(1)

    @pl.when(j == 0)
    def _init():
        # Lane-dense Q projection of this query tile; cached across KV steps.
        q_scr[...] = jnp.dot(
            xq_ref[...].astype(mxu_dtype), wq_ref[...],
            preferred_element_type=jnp.float32).astype(q_scr.dtype)
        att_scr[...] = jnp.zeros_like(att_scr)

    # Fused lane-dense K|V projection of the streamed KV tile: (tk, 2H).
    kv = jnp.dot(xkv_ref[...].astype(mxu_dtype), wkv_ref[...],
                 preferred_element_type=jnp.float32).astype(mxu_dtype)
    q_full = q_scr[...]                    # (tq, H)  mxu_dtype
    k_full = kv[:, :H]                     # (tk, H)  mxu_dtype
    v_full = kv[:, H:]                     # (tk, H)  mxu_dtype

    # Per-head tanh attention (no softmax / scaling in this module), summed
    # over KV tiles.  num_heads is static & small -> unrolled static views.
    for hh in range(num_heads):
        sl = slice(hh * d, (hh + 1) * d)
        # score_h = q_h @ k_h^T  (K consumed untransposed by the MXU).
        s = lax.dot_general(
            q_full[:, sl], k_full[:, sl],
            dimension_numbers=(((1,), (1,)), ((), ())),
            preferred_element_type=jnp.float32)
        s = jnp.tanh(s)                    # f32 tanh (v5e-safe)
        att_scr[:, sl] = att_scr[:, sl] + jnp.dot(
            s.astype(mxu_dtype), v_full[:, sl],
            preferred_element_type=jnp.float32)

    @pl.when(j == pl.num_programs(1) - 1)
    def _finalize():
        # Single lane-dense FFN matmul over the head-major (tq, H) accumulator.
        ffn = jnp.dot(att_scr[...].astype(mxu_dtype), wf_ref[...],
                      preferred_element_type=jnp.float32) + bf_ref[...]
        o_ref[...] = jnp.maximum(ffn, 0.0).astype(o_ref.dtype)


# ---------------------------------------------------------------------------
# Wrapper: host-side weight prep + tiled pallas_call
# ---------------------------------------------------------------------------
def _pick_tile(n, candidates=(512, 256, 128)):
    for c in candidates:
        if n % c == 0:
            return c
    return n


def global_att_forward(x, wq_t, wk_t, wv_t, wf_t, bf, *, num_heads,
                       mxu_dtype=jnp.bfloat16):
    """Global_ATT.forward: returns (inputs, att_hidden)."""
    N, H = x.shape
    assert H % num_heads == 0
    tq = _pick_tile(N)
    tk = _pick_tile(N)

    # Host-side, one-time weight prep:
    #   * K|V fused into one lane-dense (H, 2H) slab (single projection matmul
    #     per streamed KV tile, no per-head slabs, no x replication).
    #   * MXU-dtype cast done once here (halves weight VMEM/DMA for bf16).
    wq = wq_t.astype(mxu_dtype)                                    # (H, H)
    wkv = jnp.concatenate([wk_t, wv_t], axis=1).astype(mxu_dtype)  # (H, 2H)
    wf = wf_t.astype(mxu_dtype)                                    # (H, H)
    bf2 = bf.reshape(1, H).astype(jnp.float32)

    kernel = functools.partial(global_att_kernel, num_heads=num_heads,
                               mxu_dtype=mxu_dtype)
    att_hidden = pl.pallas_call(
        kernel,
        out_shape=jax.ShapeDtypeStruct((N, H), x.dtype),
        grid=(N // tq, N // tk),
        in_specs=[
            pl.BlockSpec((tq, H), lambda i, j: (i, 0)),       # x: query tile
            pl.BlockSpec((tk, H), lambda i, j: (j, 0)),       # x: KV tile
            pl.BlockSpec((H, H), lambda i, j: (0, 0)),        # Wq (resident)
            pl.BlockSpec((H, 2 * H), lambda i, j: (0, 0)),    # Wk|Wv (resident)
            pl.BlockSpec((H, H), lambda i, j: (0, 0)),        # Wffn (resident)
            pl.BlockSpec((1, H), lambda i, j: (0, 0)),        # ffn bias
        ],
        out_specs=pl.BlockSpec((tq, H), lambda i, j: (i, 0)),
        scratch_shapes=[
            pltpu.VMEM((tq, H), mxu_dtype),       # cached Q projection
            pltpu.VMEM((tq, H), jnp.float32),     # attention accumulator
        ],
        compiler_params=pltpu.CompilerParams(
            dimension_semantics=("parallel", "arbitrary")),
    )(x, x, wq, wkv, wf, bf2)
    return x, att_hidden


# ---------------------------------------------------------------------------
# Pure-JAX reference (mirrors the PyTorch forward, eval mode)
# ---------------------------------------------------------------------------
def ref_global_att(x, wq_t, wk_t, wv_t, wf_t, bf, num_heads):
    N, H = x.shape
    d = H // num_heads
    q = x @ wq_t
    k = x @ wk_t
    v = x @ wv_t
    q3 = q.reshape(N, num_heads, d).transpose(1, 0, 2)
    k3 = k.reshape(N, num_heads, d).transpose(1, 0, 2)
    v3 = v.reshape(N, num_heads, d).transpose(1, 0, 2)
    score = jnp.tanh(jnp.einsum('hnd,hmd->hnm', q3, k3))
    att = jnp.einsum('hnm,hmd->hnd', score, v3)
    att = att.transpose(1, 0, 2).reshape(N, H)
    att_hidden = jax.nn.relu(att @ wf_t + bf)
    return x, att_hidden


# ---------------------------------------------------------------------------
if __name__ == "__main__":
    # Module hyper-parameters (small, consistent with the PyTorch __init__).
    hidden_size = 32
    num_heads = 4
    seq_len = 8
    # dp_att / dp_ffn: dropout probabilities; identity in eval mode.

    key = jax.random.PRNGKey(0)
    key, kx = jax.random.split(key)
    inputs = jax.random.normal(kx, (seq_len, hidden_size), dtype=jnp.float32)

    # Deterministic synthetic weights.  PyTorch stores Linear weights as
    # (out, in); we generate (in, out) directly (already transposed), which is
    # equivalent for synthetic init and lets the kernel compute x @ W.
    ks = jax.random.split(key, 5)
    wq_t = 0.1 * jax.random.normal(ks[0], (hidden_size, hidden_size), jnp.float32)
    wk_t = 0.1 * jax.random.normal(ks[1], (hidden_size, hidden_size), jnp.float32)
    wv_t = 0.1 * jax.random.normal(ks[2], (hidden_size, hidden_size), jnp.float32)
    wf_t = 0.1 * jax.random.normal(ks[3], (hidden_size, hidden_size), jnp.float32)
    bf = 0.1 * jax.random.normal(ks[4], (hidden_size,), jnp.float32)

    ref_inputs, ref_att = ref_global_att(inputs, wq_t, wk_t, wv_t, wf_t, bf,
                                         num_heads)

    # Primary path: bf16 MXU operands / f32 accumulation (per the review).
    fwd_bf16 = jax.jit(functools.partial(global_att_forward,
                                         num_heads=num_heads,
                                         mxu_dtype=jnp.bfloat16))
    out_inputs, out_att = fwd_bf16(inputs, wq_t, wk_t, wv_t, wf_t, bf)
    out_inputs = jax.block_until_ready(out_inputs)
    out_att = jax.block_until_ready(out_att)
    assert out_inputs.shape == (seq_len, hidden_size)
    assert out_att.shape == (seq_len, hidden_size)
    assert jnp.allclose(out_inputs, ref_inputs), "inputs pass-through mismatch"
    assert jnp.allclose(out_att, ref_att, atol=5e-2, rtol=5e-2), \
        "att_hidden mismatch vs reference (bf16 MXU path)"

    # Sanity check: f32 end-to-end path with tight tolerance.
    fwd_f32 = jax.jit(functools.partial(global_att_forward,
                                        num_heads=num_heads,
                                        mxu_dtype=jnp.float32))
    _, out_att_f32 = fwd_f32(inputs, wq_t, wk_t, wv_t, wf_t, bf)
    out_att_f32 = jax.block_until_ready(out_att_f32)
    assert jnp.allclose(out_att_f32, ref_att, atol=1e-5, rtol=1e-5), \
        "att_hidden mismatch vs reference (f32 path)"

    print("KERNEL_OK")
</pallas_src>

<mosaic_0001>
module attributes {stable_mosaic.version = 11 : i64} {
  func.func @global_att_kernel(%arg0: i32, %arg1: i32, %arg2: memref<8x32xf32, #tpu.memory_space<vmem>>, %arg3: memref<8x32xf32, #tpu.memory_space<vmem>>, %arg4: memref<32x32xbf16, #tpu.memory_space<vmem>>, %arg5: memref<32x64xbf16, #tpu.memory_space<vmem>>, %arg6: memref<32x32xbf16, #tpu.memory_space<vmem>>, %arg7: memref<1x32xf32, #tpu.memory_space<vmem>>, %arg8: memref<8x32xf32, #tpu.memory_space<vmem>>, %arg9: memref<8x32xbf16, #tpu.memory_space<vmem>>, %arg10: memref<8x32xf32, #tpu.memory_space<vmem>>) attributes {dimension_semantics = [#tpu.dimension_semantics<parallel>, #tpu.dimension_semantics<arbitrary>], iteration_bounds = array<i64: 1, 1>, scalar_prefetch = 0 : i64, scratch_operands = 2 : i64, tpu.core_type = #tpu.core_type<tc>, window_params = [{transform_indices = @transform_0, window_bounds = array<i64: 8, 32>}, {transform_indices = @transform_1, window_bounds = array<i64: 8, 32>}, {pipeline_mode = #tpu.pipeline_mode<synchronous>, transform_indices = @transform_2, window_bounds = array<i64: 32, 32>}, {pipeline_mode = #tpu.pipeline_mode<synchronous>, transform_indices = @transform_3, window_bounds = array<i64: 32, 64>}, {pipeline_mode = #tpu.pipeline_mode<synchronous>, transform_indices = @transform_4, window_bounds = array<i64: 32, 32>}, {pipeline_mode = #tpu.pipeline_mode<synchronous>, transform_indices = @transform_5, window_bounds = array<i64: 1, 32>}, {transform_indices = @transform_6, window_bounds = array<i64: 8, 32>}]} {
    %c0_i32 = arith.constant 0 : i32
    %0 = arith.cmpi eq, %arg1, %c0_i32 : i32
    %1 = arith.extui %0 : i1 to i32
    %c0_i32_0 = arith.constant 0 : i32
    %2 = arith.cmpi ne, %1, %c0_i32_0 : i32
    scf.if %2 {
      %c0_29 = arith.constant 0 : index
      %c0_30 = arith.constant 0 : index
      %54 = vector.load %arg2[%c0_29, %c0_30] : memref<8x32xf32, #tpu.memory_space<vmem>>, vector<8x32xf32>
      %55 = arith.truncf %54 : vector<8x32xf32> to vector<8x32xbf16>
      %c0_31 = arith.constant 0 : index
      %c0_32 = arith.constant 0 : index
      %56 = vector.load %arg4[%c0_31, %c0_32] : memref<32x32xbf16, #tpu.memory_space<vmem>>, vector<32x32xbf16>
      %cst_33 = arith.constant dense<0.000000e+00> : vector<8x32xf32>
      %57 = tpu.matmul %55, %56, %cst_33 {dimension_numbers = #tpu.dot_dimension_numbers<[1], [0], [0], [1], [0, 0, 1, 1], [], []>} : vector<8x32xbf16>, vector<32x32xbf16>, vector<8x32xf32> -> vector<8x32xf32>
      %58 = arith.truncf %57 : vector<8x32xf32> to vector<8x32xbf16>
      %c0_34 = arith.constant 0 : index
      %c0_35 = arith.constant 0 : index
      %59 = vector.load %arg9[%c0_34, %c0_35] : memref<8x32xbf16, #tpu.memory_space<vmem>>, vector<8x32xbf16>
      tpu.vector_store %arg9[%c0_34, %c0_35], %58 {strides = array<i32>} : memref<8x32xbf16, #tpu.memory_space<vmem>>, vector<8x32xbf16>,
      %cst_36 = arith.constant 0.000000e+00 : f32
      %60 = vector.broadcast %cst_36 : f32 to vector<8x32xf32>
      %c0_37 = arith.constant 0 : index
      %c0_38 = arith.constant 0 : index
      %61 = vector.load %arg10[%c0_37, %c0_38] : memref<8x32xf32, #tpu.memory_space<vmem>>, vector<8x32xf32>
      tpu.vector_store %arg10[%c0_37, %c0_38], %60 {strides = array<i32>} : memref<8x32xf32, #tpu.memory_space<vmem>>, vector<8x32xf32>,
    } else {
    }
    %c0 = arith.constant 0 : index
    %c0_1 = arith.constant 0 : index
    %3 = vector.load %arg3[%c0, %c0_1] : memref<8x32xf32, #tpu.memory_space<vmem>>, vector<8x32xf32>
    %4 = arith.truncf %3 : vector<8x32xf32> to vector<8x32xbf16>
    %c0_2 = arith.constant 0 : index
    %c0_3 = arith.constant 0 : index
    %5 = vector.load %arg5[%c0_2, %c0_3] : memref<32x64xbf16, #tpu.memory_space<vmem>>, vector<32x64xbf16>
    %cst = arith.constant dense<0.000000e+00> : vector<8x64xf32>
    %6 = tpu.matmul %4, %5, %cst {dimension_numbers = #tpu.dot_dimension_numbers<[1], [0], [0], [1], [0, 0, 1, 1], [], []>} : vector<8x32xbf16>, vector<32x64xbf16>, vector<8x64xf32> -> vector<8x64xf32>
    %7 = arith.truncf %6 : vector<8x64xf32> to vector<8x64xbf16>
    %c0_4 = arith.constant 0 : index
    %c0_5 = arith.constant 0 : index
    %8 = vector.load %arg9[%c0_4, %c0_5] : memref<8x32xbf16, #tpu.memory_space<vmem>>, vector<8x32xbf16>
    %9 = vector.extract_strided_slice %7 {offsets = [0, 0], sizes = [8, 32], strides = [1, 1]} : vector<8x64xbf16> to vector<8x32xbf16>
    %10 = vector.extract_strided_slice %7 {offsets = [0, 32], sizes = [8, 32], strides = [1, 1]} : vector<8x64xbf16> to vector<8x32xbf16>
    %11 = vector.extract_strided_slice %8 {offsets = [0, 0], sizes = [8, 8], strides = [1, 1]} : vector<8x32xbf16> to vector<8x8xbf16>
    %12 = vector.extract_strided_slice %9 {offsets = [0, 0], sizes = [8, 8], strides = [1, 1]} : vector<8x32xbf16> to vector<8x8xbf16>
    %cst_6 = arith.constant dense<0.000000e+00> : vector<8x8xf32>
    %13 = tpu.matmul %11, %12, %cst_6 {dimension_numbers = #tpu.dot_dimension_numbers<[1], [1], [0], [0], [0, 0, 1, 0], [], []>} : vector<8x8xbf16>, vector<8x8xbf16>, vector<8x8xf32> -> vector<8x8xf32>
    %14 = math.tanh %13 : vector<8x8xf32>
    %c0_7 = arith.constant 0 : index
    %c0_8 = arith.constant 0 : index
    %15 = vector.load %arg10[%c0_7, %c0_8] : memref<8x32xf32, #tpu.memory_space<vmem>>, vector<8x8xf32>
    %16 = arith.truncf %14 : vector<8x8xf32> to vector<8x8xbf16>
    %17 = vector.extract_strided_slice %10 {offsets = [0, 0], sizes = [8, 8], strides = [1, 1]} : vector<8x32xbf16> to vector<8x8xbf16>
    %cst_9 = arith.constant dense<0.000000e+00> : vector<8x8xf32>
    %18 = tpu.matmul %16, %17, %cst_9 {dimension_numbers = #tpu.dot_dimension_numbers<[1], [0], [0], [1], [0, 0, 1, 1], [], []>} : vector<8x8xbf16>, vector<8x8xbf16>, vector<8x8xf32> -> vector<8x8xf32>
    %19 = arith.addf %15, %18 : vector<8x8xf32>
    %c0_10 = arith.constant 0 : index
    %c0_11 = arith.constant 0 : index
    %20 = vector.load %arg10[%c0_10, %c0_11] : memref<8x32xf32, #tpu.memory_space<vmem>>, vector<8x8xf32>
    tpu.vector_store %arg10[%c0_10, %c0_11], %19 {strides = array<i32>} : memref<8x32xf32, #tpu.memory_space<vmem>>, vector<8x8xf32>,
    %21 = vector.extract_strided_slice %8 {offsets = [0, 8], sizes = [8, 8], strides = [1, 1]} : vector<8x32xbf16> to vector<8x8xbf16>
    %22 = vector.extract_strided_slice %9 {offsets = [0, 8], sizes = [8, 8], strides = [1, 1]} : vector<8x32xbf16> to vector<8x8xbf16>
    %cst_12 = arith.constant dense<0.000000e+00> : vector<8x8xf32>
    %23 = tpu.matmul %21, %22, %cst_12 {dimension_numbers = #tpu.dot_dimension_numbers<[1], [1], [0], [0], [0, 0, 1, 0], [], []>} : vector<8x8xbf16>, vector<8x8xbf16>, vector<8x8xf32> -> vector<8x8xf32>
    %24 = math.tanh %23 : vector<8x8xf32>
    %c0_13 = arith.constant 0 : index
    %c8 = arith.constant 8 : index
    %25 = vector.load %arg10[%c0_13, %c8] : memref<8x32xf32, #tpu.memory_space<vmem>>, vector<8x8xf32>
    %26 = arith.truncf %24 : vector<8x8xf32> to vector<8x8xbf16>
    %27 = vector.extract_strided_slice %10 {offsets = [0, 8], sizes = [8, 8], strides = [1, 1]} : vector<8x32xbf16> to vector<8x8xbf16>
    %cst_14 = arith.constant dense<0.000000e+00> : vector<8x8xf32>
    %28 = tpu.matmul %26, %27, %cst_14 {dimension_numbers = #tpu.dot_dimension_numbers<[1], [0], [0], [1], [0, 0, 1, 1], [], []>} : vector<8x8xbf16>, vector<8x8xbf16>, vector<8x8xf32> -> vector<8x8xf32>
    %29 = arith.addf %25, %28 : vector<8x8xf32>
    %c0_15 = arith.constant 0 : index
    %c8_16 = arith.constant 8 : index
    %30 = vector.load %arg10[%c0_15, %c8_16] : memref<8x32xf32, #tpu.memory_space<vmem>>, vector<8x8xf32>
    tpu.vector_store %arg10[%c0_15, %c8_16], %29 {strides = array<i32>} : memref<8x32xf32, #tpu.memory_space<vmem>>, vector<8x8xf32>,
    %31 = vector.extract_strided_slice %8 {offsets = [0, 16], sizes = [8, 8], strides = [1, 1]} : vector<8x32xbf16> to vector<8x8xbf16>
    %32 = vector.extract_strided_slice %9 {offsets = [0, 16], sizes = [8, 8], strides = [1, 1]} : vector<8x32xbf16> to vector<8x8xbf16>
    %cst_17 = arith.constant dense<0.000000e+00> : vector<8x8xf32>
    %33 = tpu.matmul %31, %32, %cst_17 {dimension_numbers = #tpu.dot_dimension_numbers<[1], [1], [0], [0], [0, 0, 1, 0], [], []>} : vector<8x8xbf16>, vector<8x8xbf16>, vector<8x8xf32> -> vector<8x8xf32>
    %34 = math.tanh %33 : vector<8x8xf32>
    %c0_18 = arith.constant 0 : index
    %c16 = arith.constant 16 : index
    %35 = vector.load %arg10[%c0_18, %c16] : memref<8x32xf32, #tpu.memory_space<vmem>>, vector<8x8xf32>
    %36 = arith.truncf %34 : vector<8x8xf32> to vector<8x8xbf16>
    %37 = vector.extract_strided_slice %10 {offsets = [0, 16], sizes = [8, 8], strides = [1, 1]} : vector<8x32xbf16> to vector<8x8xbf16>
    %cst_19 = arith.constant dense<0.000000e+00> : vector<8x8xf32>
    %38 = tpu.matmul %36, %37, %cst_19 {dimension_numbers = #tpu.dot_dimension_numbers<[1], [0], [0], [1], [0, 0, 1, 1], [], []>} : vector<8x8xbf16>, vector<8x8xbf16>, vector<8x8xf32> -> vector<8x8xf32>
    %39 = arith.addf %35, %38 : vector<8x8xf32>
    %c0_20 = arith.constant 0 : index
    %c16_21 = arith.constant 16 : index
    %40 = vector.load %arg10[%c0_20, %c16_21] : memref<8x32xf32, #tpu.memory_space<vmem>>, vector<8x8xf32>
    tpu.vector_store %arg10[%c0_20, %c16_21], %39 {strides = array<i32>} : memref<8x32xf32, #tpu.memory_space<vmem>>, vector<8x8xf32>,
    %41 = vector.extract_strided_slice %8 {offsets = [0, 24], sizes = [8, 8], strides = [1, 1]} : vector<8x32xbf16> to vector<8x8xbf16>
    %42 = vector.extract_strided_slice %9 {offsets = [0, 24], sizes = [8, 8], strides = [1, 1]} : vector<8x32xbf16> to vector<8x8xbf16>
    %cst_22 = arith.constant dense<0.000000e+00> : vector<8x8xf32>
    %43 = tpu.matmul %41, %42, %cst_22 {dimension_numbers = #tpu.dot_dimension_numbers<[1], [1], [0], [0], [0, 0, 1, 0], [], []>} : vector<8x8xbf16>, vector<8x8xbf16>, vector<8x8xf32> -> vector<8x8xf32>
    %44 = math.tanh %43 : vector<8x8xf32>
    %c0_23 = arith.constant 0 : index
    %c24 = arith.constant 24 : index
    %45 = vector.load %arg10[%c0_23, %c24] : memref<8x32xf32, #tpu.memory_space<vmem>>, vector<8x8xf32>
    %46 = arith.truncf %44 : vector<8x8xf32> to vector<8x8xbf16>
    %47 = vector.extract_strided_slice %10 {offsets = [0, 24], sizes = [8, 8], strides = [1, 1]} : vector<8x32xbf16> to vector<8x8xbf16>
    %cst_24 = arith.constant dense<0.000000e+00> : vector<8x8xf32>
    %48 = tpu.matmul %46, %47, %cst_24 {dimension_numbers = #tpu.dot_dimension_numbers<[1], [0], [0], [1], [0, 0, 1, 1], [], []>} : vector<8x8xbf16>, vector<8x8xbf16>, vector<8x8xf32> -> vector<8x8xf32>
    %49 = arith.addf %45, %48 : vector<8x8xf32>
    %c0_25 = arith.constant 0 : index
    %c24_26 = arith.constant 24 : index
    %50 = vector.load %arg10[%c0_25, %c24_26] : memref<8x32xf32, #tpu.memory_space<vmem>>, vector<8x8xf32>
    tpu.vector_store %arg10[%c0_25, %c24_26], %49 {strides = array<i32>} : memref<8x32xf32, #tpu.memory_space<vmem>>, vector<8x8xf32>,
    %c0_i32_27 = arith.constant 0 : i32
    %51 = arith.cmpi eq, %arg1, %c0_i32_27 : i32
    %52 = arith.extui %51 : i1 to i32
    %c0_i32_28 = arith.constant 0 : i32
    %53 = arith.cmpi ne, %52, %c0_i32_28 : i32
    scf.if %53 {
      %c0_29 = arith.constant 0 : index
      %c0_30 = arith.constant 0 : index
      %54 = vector.load %arg10[%c0_29, %c0_30] : memref<8x32xf32, #tpu.memory_space<vmem>>, vector<8x32xf32>
      %55 = arith.truncf %54 : vector<8x32xf32> to vector<8x32xbf16>
      %c0_31 = arith.constant 0 : index
      %c0_32 = arith.constant 0 : index
      %56 = vector.load %arg6[%c0_31, %c0_32] : memref<32x32xbf16, #tpu.memory_space<vmem>>, vector<32x32xbf16>
      %cst_33 = arith.constant dense<0.000000e+00> : vector<8x32xf32>
      %57 = tpu.matmul %55, %56, %cst_33 {dimension_numbers = #tpu.dot_dimension_numbers<[1], [0], [0], [1], [0, 0, 1, 1], [], []>} : vector<8x32xbf16>, vector<32x32xbf16>, vector<8x32xf32> -> vector<8x32xf32>
      %c0_34 = arith.constant 0 : index
      %c0_35 = arith.constant 0 : index
      %58 = vector.load %arg7[%c0_34, %c0_35] : memref<1x32xf32, #tpu.memory_space<vmem>>, vector<1x32xf32>
      %59 = vector.broadcast %58 : vector<1x32xf32> to vector<8x32xf32>
      %60 = arith.addf %57, %59 : vector<8x32xf32>
      %cst_36 = arith.constant 0.000000e+00 : f32
      %61 = vector.broadcast %cst_36 : f32 to vector<8x32xf32>
      %62 = arith.maximumf %60, %61 : vector<8x32xf32>
      %c0_37 = arith.constant 0 : index
      %c0_38 = arith.constant 0 : index
      %63 = vector.load %arg8[%c0_37, %c0_38] : memref<8x32xf32, #tpu.memory_space<vmem>>, vector<8x32xf32>
      tpu.vector_store %arg8[%c0_37, %c0_38], %62 {strides = array<i32>} : memref<8x32xf32, #tpu.memory_space<vmem>>, vector<8x32xf32>,
    } else {
    }
    return
  }
  func.func @transform_0(%arg0: i32, %arg1: i32) -> (i32, i32) {
    %c0_i32 = arith.constant 0 : i32
    %c0_i32_0 = arith.constant 0 : i32
    return %arg0, %c0_i32 : i32, i32
  }
  func.func @transform_1(%arg0: i32, %arg1: i32) -> (i32, i32) {
    %c0_i32 = arith.constant 0 : i32
    %c0_i32_0 = arith.constant 0 : i32
    return %arg1, %c0_i32 : i32, i32
  }
  func.func @transform_2(%arg0: i32, %arg1: i32) -> (i32, i32) {
    %c0_i32 = arith.constant 0 : i32
    %c0_i32_0 = arith.constant 0 : i32
    %c0_i32_1 = arith.constant 0 : i32
    return %c0_i32, %c0_i32_0 : i32, i32
  }
  func.func @transform_3(%arg0: i32, %arg1: i32) -> (i32, i32) {
    %c0_i32 = arith.constant 0 : i32
    %c0_i32_0 = arith.constant 0 : i32
    %c0_i32_1 = arith.constant 0 : i32
    return %c0_i32, %c0_i32_0 : i32, i32
  }
  func.func @transform_4(%arg0: i32, %arg1: i32) -> (i32, i32) {
    %c0_i32 = arith.constant 0 : i32
    %c0_i32_0 = arith.constant 0 : i32
    %c0_i32_1 = arith.constant 0 : i32
    return %c0_i32, %c0_i32_0 : i32, i32
  }
  func.func @transform_5(%arg0: i32, %arg1: i32) -> (i32, i32) {
    %c0_i32 = arith.constant 0 : i32
    %c0_i32_0 = arith.constant 0 : i32
    %c0_i32_1 = arith.constant 0 : i32
    return %c0_i32, %c0_i32_0 : i32, i32
  }
  func.func @transform_6(%arg0: i32, %arg1: i32) -> (i32, i32) {
    %c0_i32 = arith.constant 0 : i32
    %c0_i32_0 = arith.constant 0 : i32
    return %arg0, %c0_i32 : i32, i32
  }
}

</mosaic_0001>

<bundles_post_ra>
// kernel: global_att_forward.1
= control target key start
LH: loop header
LB: loop body
LE: loop exit
PB: predicated region body
PF: predicated region fallthrough
CT: control target
= control target key end

     0   :  { %v843_v1 = vmov 0.0   ;;  %vm844_vm0 = vmmov 0   ;;  %vm47_vm1 = vcmask 261120   ;;  %s989_s0 = inlined_call_operand.vmem [shape: f32[8,32], index: 0, kind: input, shape index: {}, may-alias: {0,1}]   ;;  %s990_s1 = inlined_call_operand.vmem [shape: f32[8,32], index: 1, kind: input, shape index: {}, may-alias: {0,1}]   ;;  %s991_s2 = inlined_call_operand.vmem [shape: bf16[32,32], index: 2, kind: input, shape index: {}]   ;;  %s992_s3 = inlined_call_operand.vmem [shape: bf16[32,64], index: 3, kind: input, shape index: {}]   ;;  %s993_s4 = inlined_call_operand.vmem [shape: bf16[32,32], index: 4, kind: input, shape index: {}]   ;;  %s994_s5 = inlined_call_operand.vmem [shape: f32[1,32], index: 5, kind: input, shape index: {}]   ;;  %s995_s6 = inlined_call_operand.hbm [shape: f32[8,32], index: 6, kind: output, shape index: {}]  }
   0x1   :  { %v804_v0 = vld [vmem:[%s991_s2] sm:$0xff]   ;;  %719 = vmatprep.subr.bf16.mxu0 %v843_v1  ;;  %727 = vmatprep.subr.bf16.mxu1 %v843_v1  ;;  %v806_v3 = vld [vmem:[%s991_s2 + $0x8] sm:$0xff]   ;;  %94 = vst.msk [vmem:[#allocation3] sm:$0xff] %vm47_vm1, %v843_v1 }
   0x2   :  { %v805_v2 = vld [vmem:[%s992_s3] sm:$0xff]   ;;  %720 = vmatpush3.bf16.msra.mxu0 %v804_v0  ;;  %723 = vmatprep.mubr.msk.bf16.mxu0 %vm844_vm0, %v843_v1  ;;  %v807_v4 = vld [vmem:[%s992_s3 + $0x8] sm:$0xff]  }
   0x3   :  { %728 = vmatpush3.bf16.msra.mxu1 %v805_v2  ;;  %721 = vmatprep.subr.bf16.mxu0 %v843_v1  ;;  %v29_v5 = vld [vmem:[%s989_s0] sm:$0xff] }
   0x4   :  { %729 = vmatprep.subr.bf16.mxu1 %v843_v1  ;;  %731 = vmatprep.mubr.msk.bf16.mxu1 %vm844_vm0, %v843_v1  ;;  %v95_v6 = vld [vmem:[%s990_s1] sm:$0xff]  ;;  %v30_v7 = vpack.c.bf16 %v29_v5, %v29_v5 }
   0x5   :  { %v96_v8 = vpack.c.bf16 %v95_v6, %v95_v6 }
   0x6   :  { %722 = vmatpush3.bf16.msra.mxu0 %v806_v3 }
   0x7   :  { %11 = vsyncpa [#allocation5], 0  ;;  %730 = vmatpush3.bf16.msra.mxu1 %v807_v4  ;;  %735 = vmatprep.subr.bf16.mxu0 %v843_v1  ;;  %vm92_vm2 = vcmask 257024   ;;  %vm159_vm3 = vcmask 64512   ;;  %s845_s0 = smov 112   ;;  %s846_s1 = smov 120  }
   0x8   :  { %741 = vmatprep.subr.bf16.mxu1 %v843_v1  ;;  %s847_s3 = smov 104   ;;  %s848_s8 = smov 88   ;;  %vm215_vm4 = vcmask 1043456   ;;  %v207_v63 = vld [vmem:[#allocation3] sm:$0xff]  ;;  %vm370_vm5 = vcmask 130112   ;;  %vm478_vm6 = vcmask 195712  }
   0x9   :  { %724 = vmatmul.mubr.msk.bf16.vlgmr.msra.gmra.mrb[0].mxu0 %vm47_vm1, %v30_v7  ;;  %s849_s9 = smov 96   ;;  %s850_s10 = smov 72   ;;  %vm586_vm7 = vcmask 261312  }
   0xa   :  { %732 = vmatmul.mubr.msk.bf16.vlgmr.msra.gmra.mrb[0].mxu1 %vm47_vm1, %v96_v8  ;;  %737 = vmatprep.mubr.msk.bf16.mxu0 %vm844_vm0, %v843_v1  ;;  %s851_s11 = smov 80   ;;  %s852_s12 = smov 8  }
   0xb   :  { %743 = vmatprep.mubr.msk.bf16.mxu1 %vm844_vm0, %v843_v1  ;;  %s853_s13 = smov 16   ;;  %s854_s18 = smov 24  }
   0xc   :  { %s855_s20 = smov [#allocation4]  }
   0xd   :  { %s667_s21 = sshll.u32 %s855_s20, 4  ;;  %s668_s21 = int_to_ptr.vmem [resolvable:$true] %s667_s21 }
   0xe   :  { %s819_s22 = scalar_lea.vmem %s668_s21, 128  ;;  %p824_p1 = scmp.lt.s32.totalorder %s668_s21, %s668_s21 }
   0xf   :  { %p820_p0 = scmp.ne.s32.totalorder %s668_s21, %s819_s22  ;;  %p825_p2 = scmp.lt.s32.totalorder %s819_s22, %s819_s22 }
  0x11   :  { %p826_p3 = por %p825_p2, %p824_p1 }
  0x13   :  { %p827_p4 = pnand %p826_p3, %p820_p0 }
  0xdc   :  { %v85_v9 = vpop.f32.mrb[0].mxu0 }
  0xdd   :  { %v91_v10 = vpack.c.bf16 %v85_v9, %v85_v9  ;;  %v151_v11 = vpop.f32.mrb[0].mxu1  ;;  %v725_v12 = vpop.f32.mrb[1].mxu0 }
  0xde   :  { %v157_v13 = vpack.c.bf16 %v151_v11, %v151_v11  ;;  %v733_v14 = vpop.f32.mrb[1].mxu1  ;;  %v88_v15 = vpop.f32.mrb[2].mxu0 }
  0xdf   :  { %93 = vst.msk [vmem:[#allocation2] sm:$0xf] %vm92_vm2, %v91_v10  ;;  %v154_v16 = vpop.f32.mrb[2].mxu1  ;;  %v726_v17 = vpop.f32.mrb[3].mxu0  ;;  %v810_v15 = vld [vmem:[%s993_s4 + $0x8] sm:$0xff]  }
  0xe0   :  { %v734_v18 = vpop.f32.mrb[3].mxu1  ;;  %374 = vrot.lane.b32.xlu1 %v157_v13, %s845_s0  ;;  %266 = vrot.lane.b32.xlu0 %v157_v13, %s846_s1  ;;  %v164_v19 = vsel %vm159_vm3, %v157_v13, 0 }
  0xe1   :  { %736 = vmatpush3.bf16.xpose.msra.mxu0 %v164_v19 }
  0xe2   :  { %747 = vmatprep.subr.bf16.mxu0 %v843_v1 }
  0xe6   :  { %v158_v20 = vld [vmem:[#allocation2] sm:$0xf] }
  0xe7   :  { %v683_v21 = vcombine.low %v158_v20, %v158_v20 }
  0xe8   :  { %738 = vmatmul.mubr.msk.bf16.vlgmr.msra.gmra.mrb[4].mxu0 %vm159_vm3, %v158_v20 }
  0xe9   :  { %372 = vrot.lane.b32.xlu1 %v683_v21, %s845_s0  ;;  %264 = vrot.lane.b32.xlu0 %v683_v21, %s846_s1 }
  0xea   :  { %749 = vmatprep.mubr.msk.bf16.mxu0 %vm844_vm0, %v843_v1 }
  0xed   :  { %480 = vrot.lane.b32.xlu1 %v683_v21, %s847_s3  ;;  %482 = vrot.lane.b32.xlu0 %v157_v13, %s847_s3 }
  0xf1   :  { %317 = vrot.lane.b32.xlu1 %v157_v13, %s848_s8  ;;  %210 = vrot.lane.b32.xlu0 %v157_v13, %s849_s9 }
  0xf5   :  { %533 = vrot.lane.b32.xlu1 %v157_v13, %s850_s10  ;;  %425 = vrot.lane.b32.xlu0 %v157_v13, %s851_s11  ;;  %v809_v13 = vld [vmem:[%s993_s4] sm:$0xff]  }
 0x152   :  { %v267_v22 = vpop.permute.xlu0 %266  ;;  %v375_v24 = vpop.permute.xlu1 %374 }
 0x153   :  { %v272_v23 = vsel %vm159_vm3, %v267_v22, 0  ;;  %v380_v26 = vsel %vm159_vm3, %v375_v24, 0 }
 0x154   :  { %748 = vmatpush3.bf16.xpose.msra.mxu0 %v272_v23 }
 0x155   :  { %759 = vmatprep.subr.bf16.mxu0 %v843_v1 }
 0x15b   :  { %v265_v25 = vpop.permute.xlu0 %264  ;;  %v373_v28 = vpop.permute.xlu1 %372 }
 0x15c   :  { %750 = vmatmul.mubr.msk.bf16.vlgmr.msra.gmra.mrb[8].mxu0 %vm159_vm3, %v265_v25 }
 0x15d   :  { %760 = vmatpush3.bf16.xpose.msra.mxu0 %v380_v26  ;;  %761 = vmatprep.mubr.msk.bf16.mxu0 %vm844_vm0, %v843_v1 }
 0x15e   :  { %771 = vmatprep.subr.bf16.mxu0 %v843_v1 }
 0x15f   :  { %v483_v27 = vpop.permute.xlu0 %482  ;;  %v481_v32 = vpop.permute.xlu1 %480 }
 0x160   :  { %v488_v30 = vsel %vm159_vm3, %v483_v27, 0 }
 0x163   :  { %v211_v29 = vpop.permute.xlu0 %210  ;;  %v318_v38 = vpop.permute.xlu1 %317 }
 0x164   :  { %v217_v31 = vsel %vm215_vm4, %v211_v29, 0  ;;  %762 = vmatmul.mubr.msk.bf16.vlgmr.msra.gmra.mrb[12].mxu0 %vm159_vm3, %v373_v28  ;;  %v323_v40 = vsel %vm215_vm4, %v318_v38, 0 }
 0x165   :  { %772 = vmatpush3.bf16.xpose.msra.mxu0 %v488_v30  ;;  %742 = vmatpush3.bf16.msra.mxu1 %v217_v31  ;;  %v690_v30 = vld [vmem:[%s994_s5] ss:$0 sm:$0xff] }
 0x166   :  { %773 = vmatprep.mubr.msk.bf16.mxu0 %vm844_vm0, %v843_v1  ;;  %753 = vmatprep.subr.bf16.mxu1 %v843_v1 }
 0x167   :  { %783 = vmatprep.subr.bf16.mxu0 %v843_v1  ;;  %v426_v49 = vpop.permute.xlu0 %425  ;;  %v534_v57 = vpop.permute.xlu1 %533 }
 0x168   :  { %v431_v52 = vsel %vm215_vm4, %v426_v49, 0  ;;  %v539_v60 = vsel %vm215_vm4, %v534_v57, 0 }
 0x16c   :  { %774 = vmatmul.mubr.msk.bf16.vlgmr.msra.gmra.mrb[16].mxu0 %vm159_vm3, %v481_v32 }
 0x16d   :  { %787 = vmatprep.mubr.msk.bf16.mxu0 %vm844_vm0, %v843_v1  ;;  %784 = vmatpush3.bf16.msra.mxu0 %v809_v13 }
 0x16e   :  { %785 = vmatprep.subr.bf16.mxu0 %v843_v1 }
 0x171   :  { %786 = vmatpush3.bf16.msra.mxu0 %v810_v15 }
 0x1bb   :  { %v200_v33 = vpop.f32.mrb[4].mxu0 }
 0x1bc   :  { %811 = vtanh.f32 %v200_v33  ;;  %v739_v34 = vpop.f32.mrb[5].mxu0 }
 0x1bd   :  { %v203_v35 = vpop.f32.mrb[6].mxu0 }
 0x1be   :  { %v740_v36 = vpop.f32.mrb[7].mxu0 }
 0x1c6   :  { %v812_v37 = vpop.eup %811 }
 0x1c7   :  { %v208_v39 = vpack.c.bf16 %v812_v37, %v812_v37 }
 0x1c9   :  { %744 = vmatmul.mubr.msk.bf16.vlgmr.msra.gmra.mrb[4].mxu1 %vm159_vm3, %v208_v39 }
 0x1ca   :  { %754 = vmatpush3.bf16.msra.mxu1 %v323_v40  ;;  %755 = vmatprep.mubr.msk.bf16.mxu1 %vm844_vm0, %v843_v1 }
 0x1cb   :  { %765 = vmatprep.subr.bf16.mxu1 %v843_v1 }
 0x22f   :  { %v308_v41 = vpop.f32.mrb[8].mxu0 }
 0x230   :  { %813 = vtanh.f32 %v308_v41  ;;  %v751_v42 = vpop.f32.mrb[9].mxu0 }
 0x231   :  { %v311_v43 = vpop.f32.mrb[10].mxu0 }
 0x232   :  { %v752_v44 = vpop.f32.mrb[11].mxu0 }
 0x237   :  { %v416_v45 = vpop.f32.mrb[12].mxu0 }
 0x238   :  { %815 = vtanh.f32 %v416_v45  ;;  %v763_v46 = vpop.f32.mrb[13].mxu0 }
 0x239   :  { %v419_v47 = vpop.f32.mrb[14].mxu0 }
 0x23a   :  { %v814_v48 = vpop.eup %813  ;;  %v764_v50 = vpop.f32.mrb[15].mxu0 }
 0x23b   :  { %v316_v51 = vpack.c.bf16 %v814_v48, %v814_v48 }
 0x23d   :  { %756 = vmatmul.mubr.msk.bf16.vlgmr.msra.gmra.mrb[8].mxu1 %vm159_vm3, %v316_v51 }
 0x23e   :  { %766 = vmatpush3.bf16.msra.mxu1 %v431_v52  ;;  %767 = vmatprep.mubr.msk.bf16.mxu1 %vm844_vm0, %v843_v1 }
 0x23f   :  { %v524_v53 = vpop.f32.mrb[16].mxu0  ;;  %777 = vmatprep.subr.bf16.mxu1 %v843_v1 }
 0x240   :  { %817 = vtanh.f32 %v524_v53  ;;  %v775_v54 = vpop.f32.mrb[17].mxu0 }
 0x241   :  { %v527_v55 = vpop.f32.mrb[18].mxu0 }
 0x242   :  { %v816_v56 = vpop.eup %815  ;;  %v776_v58 = vpop.f32.mrb[19].mxu0 }
 0x243   :  { %v424_v59 = vpack.c.bf16 %v816_v56, %v816_v56 }
 0x245   :  { %768 = vmatmul.mubr.msk.bf16.vlgmr.msra.gmra.mrb[12].mxu1 %vm159_vm3, %v424_v59 }
 0x246   :  { %778 = vmatpush3.bf16.msra.mxu1 %v539_v60  ;;  %779 = vmatprep.mubr.msk.bf16.mxu1 %vm844_vm0, %v843_v1 }
 0x24a   :  { %v818_v61 = vpop.eup %817 }
 0x24b   :  { %v532_v62 = vpack.c.bf16 %v818_v61, %v818_v61 }
 0x24d   :  { %780 = vmatmul.mubr.msk.bf16.vlgmr.msra.gmra.mrb[16].mxu1 %vm159_vm3, %v532_v62 }
 0x29c   :  { %v253_v0 = vpop.f32.mrb[4].mxu1 }
 0x29d   :  { %v259_v2 = vadd.f32 %v253_v0, %v207_v63  ;;  %v745_v3 = vpop.f32.mrb[5].mxu1 }
 0x29e   :  { %v256_v4 = vpop.f32.mrb[6].mxu1 }
 0x29f   :  { %260 = vst.msk [vmem:[#allocation3] sm:$0xff] %vm159_vm3, %v259_v2  ;;  %v746_v5 = vpop.f32.mrb[7].mxu1 }
 0x2a6   :  { %v315_v20 = vld [vmem:[#allocation3] sm:$0xff] }
 0x310   :  { %v359_v6 = vpop.f32.mrb[8].mxu1 }
 0x311   :  { %366 = vrot.lane.b32.xlu0 %v359_v6, %s852_s12  ;;  %v757_v7 = vpop.f32.mrb[9].mxu1 }
 0x312   :  { %v362_v8 = vpop.f32.mrb[10].mxu1 }
 0x313   :  { %v758_v9 = vpop.f32.mrb[11].mxu1 }
 0x318   :  { %v467_v10 = vpop.f32.mrb[12].mxu1 }
 0x319   :  { %474 = vrot.lane.b32.xlu1 %v467_v10, %s853_s13  ;;  %v769_v11 = vpop.f32.mrb[13].mxu1 }
 0x31a   :  { %v470_v12 = vpop.f32.mrb[14].mxu1 }
 0x31b   :  { %v770_v14 = vpop.f32.mrb[15].mxu1 }
 0x320   :  { %v575_v16 = vpop.f32.mrb[16].mxu1 }
 0x321   :  { %582 = vrot.lane.b32.xlu0 %v575_v16, %s854_s18  ;;  %v781_v17 = vpop.f32.mrb[17].mxu1 }
 0x322   :  { %v578_v18 = vpop.f32.mrb[18].mxu1 }
 0x323   :  { %v782_v19 = vpop.f32.mrb[19].mxu1 }
 0x383   :  { %v367_v21 = vpop.permute.xlu0 %366 }
 0x384   :  { %v369_v22 = vadd.f32 %v367_v21, %v315_v20 }
 0x386   :  { %371 = vst.msk [vmem:[#allocation3] sm:$0xff] %vm370_vm5, %v369_v22 }
 0x38b   :  { %v475_v24 = vpop.permute.xlu1 %474 }
 0x38d   :  { %v423_v23 = vld [vmem:[#allocation3] sm:$0xff] }
 0x38e   :  { %v477_v25 = vadd.f32 %v475_v24, %v423_v23 }
 0x390   :  { %479 = vst.msk [vmem:[#allocation3] sm:$0xff] %vm478_vm6, %v477_v25 }
 0x393   :  { %v583_v1 = vpop.permute.xlu0 %582 }
 0x397   :  { %v531_v26 = vld [vmem:[#allocation3] sm:$0xff] }
 0x398   :  { %v585_v27 = vadd.f32 %v583_v1, %v531_v26 }
 0x39a   :  { %587 = vst.msk [vmem:[#allocation3] sm:$0xff] %vm586_vm7, %v585_v27 }
 0x3a1   :  { %v591_v28 = vld [vmem:[#allocation3] sm:$0xff] }
 0x3a2   :  { %v592_v29 = vpack.c.bf16 %v591_v28, %v591_v28 }
 0x3a4   :  { %788 = vmatmul.mubr.msk.bf16.vlgmr.msra.gmra.mrb[20].mxu0 %vm47_vm1, %v592_v29 }
 0x477   :  { %v653_v31 = vpop.f32.mrb[20].mxu0 }
 0x478   :  { %v654_v32 = vadd.f32 %v690_v30, %v653_v31  ;;  %v789_v33 = vpop.f32.mrb[21].mxu0 }
 0x479   :  { %v656_v34 = vpop.f32.mrb[22].mxu0 }
 0x47a   :  { %v659_v35 = vmax.f32 %v654_v32, 0.0  ;;  %v790_v36 = vpop.f32.mrb[23].mxu0 }
 0x47c   :  { %660 = vst.msk [vmem:[#allocation4] sm:$0xff] %vm47_vm1, %v659_v35 }
 0x47d   :  { %830 = shalt.err (!%p827_p4)
}
 0x47e   :  { %s831_s24 = scalar_lea.hbm %s995_s6, 128 }
 0x47f   :  { %p832_p5 = scmp.ne.s32.totalorder %s995_s6, %s831_s24  ;;  %p835_p6 = scmp.lt.u32.totalorder %s831_s24, %s995_s6 }
 0x481   :  { %p837_p7 = pnand %p835_p6, %p832_p5 }
 0x483   :  { %840 = shalt.err (!%p837_p7)
}
 0x484   :  { %670 = dma.vmem_to_hbm [thread:$0]  %s668_s21, 128, %s995_s6, [#allocation5]  }
 0x485   :  { %841 = dma.done.wait [#allocation5], 128  }
 0x486   :  { %842 = vsyncadd [#allocation5], 4294967168 }
 0x487   :  { %674 = vsyncpa [#allocation5], 1 }

</bundles_post_ra>
